<compile_context>
chip_gen: v7x
topology: tpu7x:2x2x1
jax: 0.10.0
libtpu: 0.0.40
codegen_flags: <defaults>
</compile_context>

<pallas_src>
import jax
import jax.numpy as jnp
from jax import lax
from jax.experimental import pallas as pl
from jax.experimental.pallas import tpu as pltpu


def _classifier_head_kernel(cls_ref, w_ref, b_ref, o_ref):
    # cls_ref: [tb, H], w_ref: [C, H], b_ref: [1, C], o_ref: [tb, C]
    logits = lax.dot_general(
        cls_ref[...], w_ref[...],
        dimension_numbers=(((1,), (1,)), ((), ())),   # contract on H; no transpose needed
        preferred_element_type=jnp.float32)            # MXU, f32 accumulation
    logits = logits + b_ref[...]                       # broadcast bias [1, C]
    o_ref[...] = jax.nn.sigmoid(logits).astype(o_ref.dtype)


def _pick_batch_tile(B):
    # f32 sublane constraint: tile must be a multiple of 8 (or the full dim).
    for tb in (512, 256, 128, 64, 32, 16, 8):
        if B % tb == 0:
            return tb
    return B  # small / odd batch: single full-B block


def cognitive_classifier_forward(last_hidden_state, fc_weight, fc_bias):
    """last_hidden_state: [B, S, H] f32
       fc_weight: [C, H] f32 (PyTorch nn.Linear layout, used as-is)
       fc_bias:   [C]    f32
       returns sigmoid(cls @ W.T + b): [B, C] f32
    """
    B, S, H = last_hidden_state.shape
    C = fc_weight.shape[0]

    # CLS select in the wrapper: only B*H*4 bytes ever reach the kernel.
    cls = last_hidden_state[:, 0, :]          # [B, H]
    b2 = fc_bias.reshape(1, C)                # [1, C]

    tb = _pick_batch_tile(B)
    grid = (pl.cdiv(B, tb),)

    return pl.pallas_call(
        _classifier_head_kernel,
        out_shape=jax.ShapeDtypeStruct((B, C), jnp.float32),
        grid_spec=pltpu.PrefetchScalarGridSpec(
            num_scalar_prefetch=0,
            grid=grid,
            in_specs=[
                pl.BlockSpec((tb, H), lambda i: (i, 0)),   # CLS tile per grid step
                pl.BlockSpec((C, H), lambda i: (0, 0)),    # weight resident across grid
                pl.BlockSpec((1, C), lambda i: (0, 0)),    # bias resident across grid
            ],
            out_specs=pl.BlockSpec((tb, C), lambda i: (i, 0)),
        ),
        compiler_params=pltpu.CompilerParams(
            dimension_semantics=("parallel",)),   # megacore-shardable batch axis (v7x)
    )(cls, fc_weight, b2)


if __name__ == "__main__":
    # Small shapes consistent with the module's forward:
    #   batch B=2, seq S=8, hidden H=32, num_cognitive_processes C=6
    B, S, H, C = 2, 8, 32, 6

    key = jax.random.PRNGKey(0)
    k_x, k_w, k_b = jax.random.split(key, 3)

    # Stand-in for BERT last_hidden_state (deterministic synthetic activations).
    last_hidden_state = jax.random.normal(k_x, (B, S, H), dtype=jnp.float32)

    # Deterministic fc params (nn.Linear(hidden_size, num_cognitive_processes)).
    bound = 1.0 / jnp.sqrt(jnp.float32(H))
    fc_weight = jax.random.uniform(k_w, (C, H), jnp.float32, -bound, bound)
    fc_bias = jax.random.uniform(k_b, (C,), jnp.float32, -bound, bound)

    out = cognitive_classifier_forward(last_hidden_state, fc_weight, fc_bias)
    out = jax.block_until_ready(out)

    # Reference check in plain JAX (same semantics as the PyTorch forward).
    ref = jax.nn.sigmoid(last_hidden_state[:, 0, :] @ fc_weight.T + fc_bias)
    assert out.shape == (B, C)
    assert jnp.allclose(out, ref, atol=1e-5, rtol=1e-5)

    print("KERNEL_OK")
</pallas_src>

<mosaic_0001>
module attributes {stable_mosaic.version = 11 : i64} {
  func.func @_classifier_head_kernel(%arg0: i32, %arg1: memref<2x32xf32, #tpu.memory_space<vmem>>, %arg2: memref<6x32xf32, #tpu.memory_space<vmem>>, %arg3: memref<1x6xf32, #tpu.memory_space<vmem>>, %arg4: memref<2x6xf32, #tpu.memory_space<vmem>>) attributes {dimension_semantics = [#tpu.dimension_semantics<parallel>], iteration_bounds = array<i64: 1>, scalar_prefetch = 0 : i64, scratch_operands = 0 : i64, tpu.core_type = #tpu.core_type<tc>, window_params = [{transform_indices = @transform_0, window_bounds = array<i64: 2, 32>}, {pipeline_mode = #tpu.pipeline_mode<synchronous>, transform_indices = @transform_1, window_bounds = array<i64: 6, 32>}, {pipeline_mode = #tpu.pipeline_mode<synchronous>, transform_indices = @transform_2, window_bounds = array<i64: 1, 6>}, {transform_indices = @transform_3, window_bounds = array<i64: 2, 6>}]} {
    %c0 = arith.constant 0 : index
    %c0_0 = arith.constant 0 : index
    %0 = vector.load %arg1[%c0, %c0_0] : memref<2x32xf32, #tpu.memory_space<vmem>>, vector<2x32xf32>
    %c0_1 = arith.constant 0 : index
    %c0_2 = arith.constant 0 : index
    %1 = vector.load %arg2[%c0_1, %c0_2] : memref<6x32xf32, #tpu.memory_space<vmem>>, vector<6x32xf32>
    %cst = arith.constant dense<0.000000e+00> : vector<2x6xf32>
    %2 = tpu.matmul %0, %1, %cst {dimension_numbers = #tpu.dot_dimension_numbers<[1], [1], [0], [0], [0, 0, 1, 0], [], []>} : vector<2x32xf32>, vector<6x32xf32>, vector<2x6xf32> -> vector<2x6xf32>
    %c0_3 = arith.constant 0 : index
    %c0_4 = arith.constant 0 : index
    %3 = vector.load %arg3[%c0_3, %c0_4] : memref<1x6xf32, #tpu.memory_space<vmem>>, vector<1x6xf32>
    %4 = vector.broadcast %3 : vector<1x6xf32> to vector<2x6xf32>
    %5 = arith.addf %2, %4 : vector<2x6xf32>
    %6 = arith.negf %5 : vector<2x6xf32>
    %7 = math.exp %6 : vector<2x6xf32>
    %cst_5 = arith.constant 1.000000e+00 : f32
    %8 = vector.broadcast %cst_5 : f32 to vector<2x6xf32>
    %9 = arith.addf %8, %7 : vector<2x6xf32>
    %10 = arith.divf %8, %9 : vector<2x6xf32>
    %c0_6 = arith.constant 0 : index
    %c0_7 = arith.constant 0 : index
    %11 = vector.load %arg4[%c0_6, %c0_7] : memref<2x6xf32, #tpu.memory_space<vmem>>, vector<2x6xf32>
    tpu.vector_store %arg4[%c0_6, %c0_7], %10 {strides = array<i32>} : memref<2x6xf32, #tpu.memory_space<vmem>>, vector<2x6xf32>,
    return
  }
  func.func @transform_0(%arg0: i32) -> (i32, i32) {
    %c0_i32 = arith.constant 0 : i32
    %c0_i32_0 = arith.constant 0 : i32
    return %arg0, %c0_i32 : i32, i32
  }
  func.func @transform_1(%arg0: i32) -> (i32, i32) {
    %c0_i32 = arith.constant 0 : i32
    %c0_i32_0 = arith.constant 0 : i32
    %c0_i32_1 = arith.constant 0 : i32
    return %c0_i32, %c0_i32_0 : i32, i32
  }
  func.func @transform_2(%arg0: i32) -> (i32, i32) {
    %c0_i32 = arith.constant 0 : i32
    %c0_i32_0 = arith.constant 0 : i32
    %c0_i32_1 = arith.constant 0 : i32
    return %c0_i32, %c0_i32_0 : i32, i32
  }
  func.func @transform_3(%arg0: i32) -> (i32, i32) {
    %c0_i32 = arith.constant 0 : i32
    %c0_i32_0 = arith.constant 0 : i32
    return %arg0, %c0_i32 : i32, i32
  }
}

</mosaic_0001>

<bundles_post_ra>
// kernel: tpu_custom_call.1
= control target key start
LH: loop header
LB: loop body
LE: loop exit
PB: predicated region body
PF: predicated region fallthrough
CT: control target
= control target key end

     0   :  { %8 = vsyncpa [#allocation3], 0  ;;  %s305_s0 = inlined_call_operand.hbm [shape: f32[2,32], index: 0, kind: input, shape index: {}]   ;;  %s306_s1 = inlined_call_operand.hbm [shape: f32[6,32], index: 1, kind: input, shape index: {}]   ;;  %s307_s2 = inlined_call_operand.vmem [shape: f32[1,6], index: 2, kind: input, shape index: {}]   ;;  %s308_s3 = inlined_call_operand.hbm [shape: f32[2,6], index: 3, kind: output, shape index: {}]  }
   0x1   :  { %9 = vsyncpa [#allocation6], 0 }
   0x2   :  { %10 = vsyncpa [#allocation4], 0  ;;  %s241_s12 = smov [#allocation2]   ;;  %s242_s14 = smov [#allocation5]  }
   0x3   :  { %s17_s13 = sshll.u32 %s241_s12, 4  ;;  %s27_s15 = sshll.u32 %s242_s14, 4  ;;  %s18_s13 = int_to_ptr.vmem [resolvable:$true] %s17_s13  ;;  %s28_s15 = int_to_ptr.vmem [resolvable:$true] %s27_s15 }
   0x4   :  { %s169_s18 = scalar_lea.hbm %s305_s0, 32 }
   0x5   :  { %p170_p0 = scmp.ne.s32.totalorder %s305_s0, %s169_s18  ;;  %p173_p1 = scmp.lt.u32.totalorder %s169_s18, %s305_s0 }
   0x7   :  { %p175_p2 = pnand %p173_p1, %p170_p0 }
   0x9   :  { %178 = shalt.err (!%p175_p2)
}
   0xa   :  { %s179_s23 = scalar_lea.vmem %s18_s13, 32  ;;  %p184_p4 = scmp.lt.s32.totalorder %s18_s13, %s18_s13 }
   0xb   :  { %p180_p3 = scmp.ne.s32.totalorder %s18_s13, %s179_s23  ;;  %p185_p5 = scmp.lt.s32.totalorder %s179_s23, %s179_s23 }
   0xd   :  { %p186_p6 = por %p185_p5, %p184_p4 }
   0xf   :  { %p187_p7 = pnand %p186_p6, %p180_p3 }
  0x11   :  { %190 = shalt.err (!%p187_p7)
}
  0x12   :  { %20 = dma.hbm_to_vmem [thread:$0]  %s305_s0, 32, %s18_s13, [#allocation3]  }
  0x13   :  { %s191_s28 = scalar_lea.hbm %s306_s1, 128 }
  0x14   :  { %p192_p8 = scmp.ne.s32.totalorder %s306_s1, %s191_s28  ;;  %p195_p9 = scmp.lt.u32.totalorder %s191_s28, %s306_s1 }
  0x16   :  { %p197_p10 = pnand %p195_p9, %p192_p8 }
  0x18   :  { %200 = shalt.err (!%p197_p10)
}
  0x19   :  { %s201_s6 = scalar_lea.vmem %s28_s15, 128  ;;  %p206_p12 = scmp.lt.s32.totalorder %s28_s15, %s28_s15 }
  0x1a   :  { %p202_p11 = scmp.ne.s32.totalorder %s28_s15, %s201_s6  ;;  %p207_p13 = scmp.lt.s32.totalorder %s201_s6, %s201_s6 }
  0x1c   :  { %p208_p0 = por %p207_p13, %p206_p12 }
  0x1e   :  { %p209_p1 = pnand %p208_p0, %p202_p11 }
  0x20   :  { %212 = shalt.err (!%p209_p1)
}
  0x21   :  { %30 = dma.hbm_to_vmem [thread:$0]  %s306_s1, 128, %s28_s15, [#allocation6]  }
  0x22   :  { %235 = dma.done.wait [#allocation3], 32  }
  0x23   :  { %236 = vsyncadd [#allocation3], 4294967264 }
  0x24   :  { %237 = dma.done.wait [#allocation6], 128  }
  0x25   :  { %238 = vsyncadd [#allocation6], 4294967168  ;;  %v243_v0 = vmov 0.0   ;;  %vm244_vm0 = vmmov 0   ;;  %vm48_vm1 = vcmask 261120   ;;  %s245_s1 = smov [#allocation7]  }
  0x26   :  { %155 = vmatprep.subr.mxu0 %v243_v0  ;;  %157 = vmatprep.mubr.msk.f32.mxu0 %vm244_vm0, %v243_v0  ;;  %v40_v1 = vld [vmem:[#allocation5] sm:$0x3f]  ;;  %v39_v2 = vld [vmem:[#allocation2] sm:$0x3]  ;;  %s139_s10 = sshll.u32 %s245_s1, 4  ;;  %vm131_vm2 = vcmask 41984   ;;  %s140_s10 = int_to_ptr.vmem [resolvable:$true] %s139_s10 }
  0x27   :  { %156 = vmatpush3.xpose.msk.msra.mxu0 %vm48_vm1, %v40_v1  ;;  %v149_v3 = vld [vmem:[%s307_s2] ss:$0 sm:$0xff]  ;;  %s213_s11 = scalar_lea.vmem %s140_s10, 32  ;;  %p218_p3 = scmp.lt.s32.totalorder %s140_s10, %s140_s10 }
  0x28   :  { %p214_p2 = scmp.ne.s32.totalorder %s140_s10, %s213_s11  ;;  %p219_p4 = scmp.lt.s32.totalorder %s213_s11, %s213_s11 }
  0x2a   :  { %158 = vmatmul.mubr.msk.f32.vlgmr.msra.gmra.mrb[0].mxu0 %vm48_vm1, %v39_v2  ;;  %p220_p5 = por %p219_p4, %p218_p3 }
  0x2c   :  { %p221_p6 = pnand %p220_p5, %p214_p2 }
  0xfd   :  { %v121_v4 = vpop.f32.mrb[0].mxu0 }
  0xfe   :  { %v122_v5 = vadd.f32 %v149_v3, %v121_v4  ;;  %v159_v6 = vpop.f32.mrb[1].mxu0 }
 0x100   :  { %v152_v7 = vmul.f32 -1.442695, %v122_v5 }
 0x102   :  { %165 = vpow2.f32 %v152_v7 }
 0x10c   :  { %v166_v8 = vpop.eup %165 }
 0x10d   :  { %v128_v9 = vadd.f32 1.0, %v166_v8 }
 0x10f   :  { %167 = vrcp.f32 %v128_v9 }
 0x119   :  { %v168_v10 = vpop.eup %167 }
 0x11a   :  { %132 = vst.msk [vmem:[#allocation7] sm:$0x3] %vm131_vm2, %v168_v10 }
 0x11b   :  { %224 = shalt.err (!%p221_p6)
}
 0x11c   :  { %s225_s13 = scalar_lea.hbm %s308_s3, 32 }
 0x11d   :  { %p226_p7 = scmp.ne.s32.totalorder %s308_s3, %s225_s13  ;;  %p229_p8 = scmp.lt.u32.totalorder %s225_s13, %s308_s3 }
 0x11f   :  { %p231_p9 = pnand %p229_p8, %p226_p7 }
 0x121   :  { %234 = shalt.err (!%p231_p9)
}
 0x122   :  { %142 = dma.vmem_to_hbm [thread:$0]  %s140_s10, 32, %s308_s3, [#allocation4]  }
 0x123   :  { %239 = dma.done.wait [#allocation4], 32  }
 0x124   :  { %240 = vsyncadd [#allocation4], 4294967264 }
 0x125   :  { %146 = vsyncpa [#allocation3], 1 }
 0x126   :  { %147 = vsyncpa [#allocation6], 1 }
 0x127   :  { %148 = vsyncpa [#allocation4], 1 }

</bundles_post_ra>
